<compile_context>
chip_gen: v6e
topology: v6e:2x2x1
jax: 0.10.0
libtpu: 0.0.40
codegen_flags: <defaults>
</compile_context>

<pallas_src>
import functools

import jax
import jax.numpy as jnp
from jax.experimental import pallas as pl
from jax.experimental.pallas import tpu as pltpu


def _residual_kernel(seed_ref, x_ref, w_ref, b_ref, o_ref, *, drop_p, row_tile):
    """dropout(x @ W + b, p=drop_p) + x for one [TR, H] row tile.

    seed_ref : SMEM scalar-prefetch ref, shape (1,), int32 -- dropout PRNG seed
    x_ref    : VMEM [TR, H]
    w_ref    : VMEM [H, H]  (input-major, so y = x @ W + b) -- resident
    b_ref    : VMEM [1, H]                                  -- resident
    o_ref    : VMEM [TR, H]
    """
    x = x_ref[...]          # native dtype; feeds MXU directly (bf16 if model is bf16)
    w = w_ref[...]

    # --- fn(x): Linear layer on the MXU, f32 accumulation ---
    y = jnp.dot(x, w, preferred_element_type=jnp.float32)
    y = y + b_ref[...].astype(jnp.float32)

    # --- dropout (training semantics: zero with prob p, scale by 1/(1-p)) ---
    if drop_p > 0.0:
        threshold = min(int(drop_p * (2 ** 32)), 2 ** 32 - 1)
        scale = jnp.float32(1.0 / (1.0 - drop_p))

        # Counter-based hash PRNG: unique uint32 per (global row, col, seed).
        seed = seed_ref[0].astype(jnp.uint32)
        row0 = (pl.program_id(0) * row_tile).astype(jnp.uint32)
        r = jax.lax.broadcasted_iota(jnp.uint32, y.shape, 0) + row0
        c = jax.lax.broadcasted_iota(jnp.uint32, y.shape, 1)
        h = (r * jnp.uint32(0x9E3779B1)) ^ (c * jnp.uint32(0x85EBCA77))
        h = h ^ (seed * jnp.uint32(0xC2B2AE3D))
        # murmur3-style finalizer (VPU-only ops, portable to interpret mode)
        h = h ^ (h >> 16)
        h = h * jnp.uint32(0x7FEB352D)
        h = h ^ (h >> 15)
        h = h * jnp.uint32(0x846CA68B)
        h = h ^ (h >> 16)

        keep = h >= jnp.uint32(threshold)          # P(keep) = 1 - p
        y = jnp.where(keep, y, 0.0) * scale

    # --- residual add (in f32 accumulator), single store per tile ---
    o_ref[...] = (y + x.astype(jnp.float32)).astype(o_ref.dtype)


def _choose_row_tile(R):
    # Full slab for small inputs; 512-row tiles otherwise (multiple of 8, big
    # enough to amortize per-step overhead, small enough to double-buffer
    # x/out + resident W inside v7x's 64 MiB VMEM at H ~ 1-4K).
    return R if R <= 512 else 512


def residual_forward(x, w, b, *, drop_p=0.1, seed=0):
    """x: [B, S, H], w: [H, H] (input-major, i.e. PyTorch weight.T), b: [H]."""
    B, S, H = x.shape
    R = B * S
    x2 = x.reshape(R, H)
    b2 = b.reshape(1, H)
    seed_arr = jnp.array([seed], dtype=jnp.int32)

    TR = _choose_row_tile(R)
    grid = (pl.cdiv(R, TR),)

    kernel = functools.partial(_residual_kernel, drop_p=drop_p, row_tile=TR)

    out = pl.pallas_call(
        kernel,
        out_shape=jax.ShapeDtypeStruct((R, H), x.dtype),
        grid_spec=pltpu.PrefetchScalarGridSpec(
            num_scalar_prefetch=1,
            grid=grid,
            in_specs=[
                pl.BlockSpec((TR, H), lambda i, seed: (i, 0)),   # x: tiled over rows
                pl.BlockSpec((H, H), lambda i, seed: (0, 0)),    # W: resident in VMEM
                pl.BlockSpec((1, H), lambda i, seed: (0, 0)),    # b: resident in VMEM
            ],
            out_specs=pl.BlockSpec((TR, H), lambda i, seed: (i, 0)),
        ),
        compiler_params=pltpu.CompilerParams(
            dimension_semantics=("parallel",),       # independent rows -> dual-TC on v7x
            vmem_limit_bytes=64 * 1024 * 1024,
        ),
    )(seed_arr, x2, w, b2)

    return out.reshape(B, S, H)


if __name__ == "__main__":
    B, S, H = 2, 8, 32
    drop_p = 0.1

    key = jax.random.PRNGKey(0)
    kx, kw, kb = jax.random.split(key, 3)

    x = jax.random.normal(kx, (B, S, H), dtype=jnp.float32)
    # Deterministic "Linear(H, H)" parameters. PyTorch stores weight as
    # (out, in); we pass it pre-transposed (in, out) so the kernel does x @ W.
    w = jax.random.normal(kw, (H, H), dtype=jnp.float32) * 0.02
    b = jax.random.normal(kb, (H,), dtype=jnp.float32) * 0.02

    out = residual_forward(x, w, b, drop_p=drop_p, seed=1234)
    out = jax.block_until_ready(out)

    assert out.shape == (B, S, H)
    assert bool(jnp.all(jnp.isfinite(out)))

    # Sanity check against a pure-JAX reference with dropout disabled
    # (the in-kernel mask path is exercised above; the p=0 path checks the
    # matmul + bias + residual numerics). Tolerance accounts for the TPU
    # MXU's multi-pass f32 matmul emulation.
    out_nodrop = jax.block_until_ready(
        residual_forward(x, w, b, drop_p=0.0, seed=0))
    ref = jnp.einsum("bsh,hk->bsk", x, w) + b + x
    assert bool(jnp.allclose(out_nodrop, ref, atol=1e-3, rtol=1e-3))

    print("KERNEL_OK")
</pallas_src>

<mosaic_0001>
module attributes {stable_mosaic.version = 11 : i64} {
  func.func @_residual_kernel(%arg0: i32, %arg1: memref<1xi32, #tpu.memory_space<smem>>, %arg2: memref<16x32xf32, #tpu.memory_space<vmem>>, %arg3: memref<32x32xf32, #tpu.memory_space<vmem>>, %arg4: memref<1x32xf32, #tpu.memory_space<vmem>>, %arg5: memref<16x32xf32, #tpu.memory_space<vmem>>) attributes {dimension_semantics = [#tpu.dimension_semantics<parallel>], iteration_bounds = array<i64: 1>, scalar_prefetch = 1 : i64, scratch_operands = 0 : i64, tpu.core_type = #tpu.core_type<tc>, window_params = [{transform_indices = @transform_0, window_bounds = array<i64: 16, 32>}, {pipeline_mode = #tpu.pipeline_mode<synchronous>, transform_indices = @transform_1, window_bounds = array<i64: 32, 32>}, {pipeline_mode = #tpu.pipeline_mode<synchronous>, transform_indices = @transform_2, window_bounds = array<i64: 1, 32>}, {transform_indices = @transform_3, window_bounds = array<i64: 16, 32>}]} {
    %c0 = arith.constant 0 : index
    %c0_0 = arith.constant 0 : index
    %0 = vector.load %arg2[%c0, %c0_0] : memref<16x32xf32, #tpu.memory_space<vmem>>, vector<16x32xf32>
    %c0_1 = arith.constant 0 : index
    %c0_2 = arith.constant 0 : index
    %1 = vector.load %arg3[%c0_1, %c0_2] : memref<32x32xf32, #tpu.memory_space<vmem>>, vector<32x32xf32>
    %cst = arith.constant dense<0.000000e+00> : vector<16x32xf32>
    %2 = tpu.matmul %0, %1, %cst {dimension_numbers = #tpu.dot_dimension_numbers<[1], [0], [0], [1], [0, 0, 1, 1], [], []>} : vector<16x32xf32>, vector<32x32xf32>, vector<16x32xf32> -> vector<16x32xf32>
    %c0_3 = arith.constant 0 : index
    %c0_4 = arith.constant 0 : index
    %3 = vector.load %arg4[%c0_3, %c0_4] : memref<1x32xf32, #tpu.memory_space<vmem>>, vector<1x32xf32>
    %4 = vector.broadcast %3 : vector<1x32xf32> to vector<16x32xf32>
    %5 = arith.addf %2, %4 : vector<16x32xf32>
    %c0_5 = arith.constant 0 : index
    %6 = memref.load %arg1[%c0_5] : memref<1xi32, #tpu.memory_space<smem>>
    %c16_i32 = arith.constant 16 : i32
    %7 = arith.muli %arg0, %c16_i32 : i32
    %8 = tpu.iota {dimensions = array<i32: 0>} : vector<16x32xi32>
    %9 = vector.broadcast %7 : i32 to vector<16x32xi32>
    %10 = arith.addi %8, %9 : vector<16x32xi32>
    %11 = tpu.iota {dimensions = array<i32: 1>} : vector<16x32xi32>
    %c-1640531535_i32 = arith.constant -1640531535 : i32
    %12 = vector.broadcast %c-1640531535_i32 : i32 to vector<16x32xi32>
    %13 = arith.muli %10, %12 : vector<16x32xi32>
    %c-2048144777_i32 = arith.constant -2048144777 : i32
    %14 = vector.broadcast %c-2048144777_i32 : i32 to vector<16x32xi32>
    %15 = arith.muli %11, %14 : vector<16x32xi32>
    %16 = arith.xori %13, %15 : vector<16x32xi32>
    %c-1028477379_i32 = arith.constant -1028477379 : i32
    %17 = arith.muli %6, %c-1028477379_i32 : i32
    %18 = vector.broadcast %17 : i32 to vector<16x32xi32>
    %19 = arith.xori %16, %18 : vector<16x32xi32>
    %c16_i32_6 = arith.constant 16 : i32
    %20 = vector.broadcast %c16_i32_6 : i32 to vector<16x32xi32>
    %21 = arith.shrui %19, %20 : vector<16x32xi32>
    %22 = arith.xori %19, %21 : vector<16x32xi32>
    %c2146121005_i32 = arith.constant 2146121005 : i32
    %23 = vector.broadcast %c2146121005_i32 : i32 to vector<16x32xi32>
    %24 = arith.muli %22, %23 : vector<16x32xi32>
    %c15_i32 = arith.constant 15 : i32
    %25 = vector.broadcast %c15_i32 : i32 to vector<16x32xi32>
    %26 = arith.shrui %24, %25 : vector<16x32xi32>
    %27 = arith.xori %24, %26 : vector<16x32xi32>
    %c-2073254261_i32 = arith.constant -2073254261 : i32
    %28 = vector.broadcast %c-2073254261_i32 : i32 to vector<16x32xi32>
    %29 = arith.muli %27, %28 : vector<16x32xi32>
    %c16_i32_7 = arith.constant 16 : i32
    %30 = vector.broadcast %c16_i32_7 : i32 to vector<16x32xi32>
    %31 = arith.shrui %29, %30 : vector<16x32xi32>
    %32 = arith.xori %29, %31 : vector<16x32xi32>
    %c429496729_i32 = arith.constant 429496729 : i32
    %33 = vector.broadcast %c429496729_i32 : i32 to vector<16x32xi32>
    %34 = arith.cmpi uge, %32, %33 : vector<16x32xi32>
    %cst_8 = arith.constant 0.000000e+00 : f32
    %35 = vector.broadcast %cst_8 : f32 to vector<16x32xf32>
    %36 = arith.select %34, %5, %35 : vector<16x32xi1>, vector<16x32xf32>
    %cst_9 = arith.constant 1.11111116 : f32
    %37 = vector.broadcast %cst_9 : f32 to vector<16x32xf32>
    %38 = arith.mulf %36, %37 : vector<16x32xf32>
    %39 = arith.addf %38, %0 : vector<16x32xf32>
    %c0_10 = arith.constant 0 : index
    %c0_11 = arith.constant 0 : index
    %40 = vector.load %arg5[%c0_10, %c0_11] : memref<16x32xf32, #tpu.memory_space<vmem>>, vector<16x32xf32>
    tpu.vector_store %arg5[%c0_10, %c0_11], %39 {strides = array<i32>} : memref<16x32xf32, #tpu.memory_space<vmem>>, vector<16x32xf32>,
    return
  }
  func.func @transform_0(%arg0: i32, %arg1: memref<1xi32, #tpu.memory_space<smem>>) -> (i32, i32) {
    %c0_i32 = arith.constant 0 : i32
    %c0_i32_0 = arith.constant 0 : i32
    return %arg0, %c0_i32 : i32, i32
  }
  func.func @transform_1(%arg0: i32, %arg1: memref<1xi32, #tpu.memory_space<smem>>) -> (i32, i32) {
    %c0_i32 = arith.constant 0 : i32
    %c0_i32_0 = arith.constant 0 : i32
    %c0_i32_1 = arith.constant 0 : i32
    return %c0_i32, %c0_i32_0 : i32, i32
  }
  func.func @transform_2(%arg0: i32, %arg1: memref<1xi32, #tpu.memory_space<smem>>) -> (i32, i32) {
    %c0_i32 = arith.constant 0 : i32
    %c0_i32_0 = arith.constant 0 : i32
    %c0_i32_1 = arith.constant 0 : i32
    return %c0_i32, %c0_i32_0 : i32, i32
  }
  func.func @transform_3(%arg0: i32, %arg1: memref<1xi32, #tpu.memory_space<smem>>) -> (i32, i32) {
    %c0_i32 = arith.constant 0 : i32
    %c0_i32_0 = arith.constant 0 : i32
    return %arg0, %c0_i32 : i32, i32
  }
}

</mosaic_0001>

<bundles_post_ra>
// kernel: tpu_custom_call.1
= control target key start
LH: loop header
LB: loop body
LE: loop exit
PB: predicated region body
PF: predicated region fallthrough
CT: control target
= control target key end

     0   :  { %10 = vsyncpa [#allocation5], 0  ;;  %s352_s0 = inlined_call_operand.<no memory space> [shape: s32[1], index: 0, kind: input, shape index: {}]   ;;  %s353_s1 = inlined_call_operand.hbm [shape: f32[16,32], index: 1, kind: input, shape index: {}]   ;;  %s354_s2 = inlined_call_operand.hbm [shape: f32[32,32], index: 2, kind: input, shape index: {}]   ;;  %s355_s3 = inlined_call_operand.vmem [shape: f32[1,32], index: 3, kind: input, shape index: {}]   ;;  %s356_s4 = inlined_call_operand.hbm [shape: f32[16,32], index: 4, kind: output, shape index: {}]  }
   0x1   :  { %11 = vsyncpa [#allocation8], 0 }
   0x2   :  { %12 = vsyncpa [#allocation6], 0  ;;  %s294_s15 = smov [#allocation4]  }
   0x3   :  { %s18_s16 = sshll.u32 %s294_s15, 4  ;;  %s19_s16 = int_to_ptr.vmem [resolvable:$true] %s18_s16 }
   0x4   :  { %s236_s17 = scalar_lea.vmem %s19_s16, 256  ;;  %p241_p1 = scmp.lt.s32.totalorder %s19_s16, %s19_s16 }
   0x5   :  { %p237_p0 = scmp.ne.s32.totalorder %s19_s16, %s236_s17  ;;  %p242_p2 = scmp.lt.s32.totalorder %s236_s17, %s236_s17 }
   0x7   :  { %p243_p3 = por %p242_p2, %p241_p1 }
   0x9   :  { %p244_p4 = pnand %p243_p3, %p237_p0 }
   0xb   :  { %247 = shalt.err (!%p244_p4)
}
   0xc   :  { %s295_s18 = smov 128   ;;  %s296_s19 = smov 8  }
   0xd   :  { %24 = dma.hbm_to_vmem [thread:$0]  %s353_s1, 256, %s19_s16, [#allocation5], %s295_s18, %s295_s18, %s296_s19  }
   0xe   :  { %s297_s22 = smov [#allocation7]  }
   0xf   :  { %s30_s23 = sshll.u32 %s297_s22, 4  ;;  %s31_s23 = int_to_ptr.vmem [resolvable:$true] %s30_s23 }
  0x10   :  { %s256_s24 = scalar_lea.vmem %s31_s23, 512  ;;  %p261_p6 = scmp.lt.s32.totalorder %s31_s23, %s31_s23 }
  0x11   :  { %p257_p5 = scmp.ne.s32.totalorder %s31_s23, %s256_s24  ;;  %p262_p7 = scmp.lt.s32.totalorder %s256_s24, %s256_s24 }
  0x13   :  { %p263_p8 = por %p262_p7, %p261_p6 }
  0x15   :  { %p264_p9 = pnand %p263_p8, %p257_p5 }
  0x17   :  { %267 = shalt.err (!%p264_p9)
}
  0x18   :  { %36 = dma.hbm_to_vmem [thread:$0]  %s354_s2, 512, %s31_s23, [#allocation8], %s295_s18, %s295_s18, %s296_s19  }
  0x19   :  { %288 = dma.done.wait [#allocation5], 256  }
  0x1a   :  { %289 = vsyncadd [#allocation5], 4294967040 }
  0x1b   :  { %290 = dma.done.wait [#allocation8], 512  }
  0x1c   :  { %291 = vsyncadd [#allocation8], 4294966784  ;;  %vm58_vm0 = vcmask 261120   ;;  %v50_v0 = vld [vmem:[#allocation7 + $0x18] sm:$0xff]  ;;  %v49_v1 = vld [vmem:[#allocation7 + $0x10] sm:$0xff]  ;;  %v142_v6 = vlaneseq  ;;  %s298_s29 = smov [#allocation9]  }
  0x1d   :  { %212 = vmatprep.subr.mxu0 %v50_v0  ;;  %v45_v2 = vld [vmem:[#allocation4] sm:$0xff]  ;;  %v48_v3 = vld [vmem:[#allocation7 + $0x8] sm:$0xff]  ;;  %v47_v4 = vld [vmem:[#allocation7] sm:$0xff]  ;;  %s155_s27 = smul.u32 3266489917, %s352_s0  ;;  %s190_s30 = sshll.u32 %s298_s29, 4  ;;  %s191_s30 = int_to_ptr.vmem [resolvable:$true] %s190_s30 }
  0x1e   :  { %213 = vmatpush3.msra.mxu0 %v50_v0  ;;  %220 = vmatprep.mubr.msk.f32.mxu0 %vm58_vm0, %v45_v2  ;;  %v46_v5 = vld [vmem:[#allocation4 + $0x8] sm:$0xff]  ;;  %v143_v7 = vshrl.u32 %v142_v6, 7  ;;  %v149_v9 = vand.u32 127, %v142_v6  ;;  %v203_v33 = vld [vmem:[%s355_s3] ss:$0 sm:$0xff]  ;;  %s268_s3 = scalar_lea.vmem %s191_s30, 256  ;;  %p273_p11 = scmp.lt.s32.totalorder %s191_s30, %s191_s30 }
  0x1f   :  { %214 = vmatprep.subr.mxu0 %v49_v1  ;;  %v156_v14 = vstv %s155_s27  ;;  %p269_p10 = scmp.ne.s32.totalorder %s191_s30, %s268_s3  ;;  %p274_p12 = scmp.lt.s32.totalorder %s268_s3, %s268_s3 }
  0x20   :  { %215 = vmatpush3.msra.mxu0 %v49_v1  ;;  %v144_v8 = vadd.s32 8, %v143_v7  ;;  %v152_v11 = vmul.u32 2246822519, %v149_v9  ;;  %v150_v12 = vmul.u32 2654435761, %v143_v7 }
  0x21   :  { %216 = vmatprep.subr.mxu0 %v48_v3  ;;  %p275_p13 = por %p274_p12, %p273_p11 }
  0x22   :  { %217 = vmatpush3.msra.mxu0 %v48_v3  ;;  %v151_v10 = vmul.u32 2654435761, %v144_v8  ;;  %v153_v15 = vxor.u32 %v152_v11, %v150_v12 }
  0x23   :  { %218 = vmatprep.subr.mxu0 %v47_v4  ;;  %p276_p0 = pnand %p275_p13, %p269_p10 }
  0x24   :  { %219 = vmatpush3.msra.mxu0 %v47_v4  ;;  %v154_v13 = vxor.u32 %v152_v11, %v151_v10  ;;  %v157_v17 = vxor.u32 %v156_v14, %v153_v15 }
  0x25   :  { %221 = vmatmul.mubr.msk.f32.vlgmr.msra.gmra.mxu0 %vm58_vm0, %v46_v5 }
  0x26   :  { %v158_v16 = vxor.u32 %v156_v14, %v154_v13  ;;  %v159_v19 = vshrl.u32 %v157_v17, 16 }
  0x28   :  { %v160_v18 = vshrl.u32 %v158_v16, 16  ;;  %v161_v21 = vxor.u32 %v159_v19, %v157_v17 }
  0x2a   :  { %v162_v20 = vxor.u32 %v160_v18, %v158_v16  ;;  %v163_v23 = vmul.u32 2146121005, %v161_v21 }
  0x2c   :  { %v164_v22 = vmul.u32 2146121005, %v162_v20  ;;  %v165_v25 = vshrl.u32 %v163_v23, 15 }
  0x2e   :  { %v166_v24 = vshrl.u32 %v164_v22, 15  ;;  %v167_v27 = vxor.u32 %v165_v25, %v163_v23 }
  0x30   :  { %v168_v26 = vxor.u32 %v166_v24, %v164_v22  ;;  %v169_v29 = vmul.u32 2221713035, %v167_v27 }
  0x32   :  { %v170_v28 = vmul.u32 2221713035, %v168_v26  ;;  %v171_v31 = vshrl.u32 %v169_v29, 16 }
  0x34   :  { %v172_v30 = vshrl.u32 %v170_v28, 16  ;;  %v173_v34 = vxor.u32 %v171_v31, %v169_v29 }
  0x36   :  { %v174_v32 = vxor.u32 %v172_v30, %v170_v28  ;;  %vm175_vm2 = vcmp.ge.u32.totalorder %v173_v34, 429496729 }
  0x38   :  { %vm176_vm1 = vcmp.ge.u32.totalorder %v174_v32, 429496729 }
  0xe5   :  { %v222_v35 = vpop.f32.mrf.mxu0 }
  0xe6   :  { %v137_v36 = vadd.f32 %v222_v35, %v203_v33 }
  0xe7   :  { %v131_v37 = vpop.f32.mrf.mxu0 }
  0xe8   :  { %v178_v38 = vsel %vm176_vm1, %v137_v36, 0.0  ;;  %v132_v39 = vadd.f32 %v203_v33, %v131_v37 }
  0xe9   :  { %v180_v40 = vmul.f32 1.1111112, %v178_v38 }
  0xea   :  { %v177_v41 = vsel %vm175_vm2, %v132_v39, 0.0 }
  0xeb   :  { %v182_v42 = vadd.f32 %v180_v40, %v46_v5  ;;  %v179_v43 = vmul.f32 1.1111112, %v177_v41 }
  0xed   :  { %184 = vst.msk [vmem:[#allocation9 + $0x8] sm:$0xff] %vm58_vm0, %v182_v42  ;;  %v181_v44 = vadd.f32 %v179_v43, %v45_v2 }
  0xef   :  { %183 = vst.msk [vmem:[#allocation9] sm:$0xff] %vm58_vm0, %v181_v44 }
  0xf0   :  { %279 = shalt.err (!%p276_p0)
}
  0xf1   :  { %196 = dma.vmem_to_hbm [thread:$0]  %s191_s30, 256, %s356_s4, [#allocation6], %s295_s18, %s295_s18, %s296_s19  }
  0xf2   :  { %292 = dma.done.wait [#allocation6], 256  }
  0xf3   :  { %293 = vsyncadd [#allocation6], 4294967040 }
  0xf4   :  { %200 = vsyncpa [#allocation5], 1 }
  0xf5   :  { %201 = vsyncpa [#allocation8], 1 }
  0xf6   :  { %202 = vsyncpa [#allocation6], 1 }

</bundles_post_ra>
